<compile_context>
chip_gen: v7x
topology: tpu7x:2x2x1
jax: 0.10.0
libtpu: 0.0.40
codegen_flags: <defaults>
</compile_context>

<pallas_src>
import jax
import jax.numpy as jnp
import numpy as np
from jax import lax
from jax.experimental import pallas as pl
from jax.experimental.pallas import tpu as pltpu  # noqa: F401  (TPU backend)

H = 32            # text_encoder_model.config.hidden_size (synthetic, small)
G = 16            # gnn_config['out_size']                 (synthetic, small)
D = H + G         # combined feature width (48)
PAD = 128         # lane-dense output width (multiple of 128); sliced back on host
EPS_NORM = 1e-12  # F.normalize eps
EPS_LN = 1e-5     # nn.LayerNorm eps


# --------------------------- single fused Pallas kernel ---------------------------
def _fused_kernel(tok_ref, gnn_ref, eos_ref, w_ref, b_ref, gamma_ref, beta_ref, out_ref):
    S, T, _ = tok_ref.shape
    f32 = jnp.float32

    # ---- per-token l2 normalization (F.normalize, p=2, eps=1e-12) -------------------
    # x * rsqrt(max(||x||^2, eps^2)) == x / max(||x||, eps); rsqrt goes to the EUP slot.
    tok = tok_ref[...]                                                      # [S, T, H]
    inv_t = lax.rsqrt(jnp.maximum(jnp.sum(tok * tok, axis=-1, keepdims=True),
                                  EPS_NORM * EPS_NORM))
    tok_n = tok * inv_t                                                     # [S, T, H]

    # ---- EOS LayerNorm (biased variance, eps inside rsqrt) --------------------------
    x = eos_ref[...]                                                        # [1, H]
    mu = jnp.mean(x, axis=-1, keepdims=True)
    var = jnp.mean((x - mu) ** 2, axis=-1, keepdims=True)
    eos_ln = (x - mu) * lax.rsqrt(var + EPS_LN) * gamma_ref[...] + beta_ref[...]  # [1, H]

    # ---- ONE fused MXU dot for both 1-row llm2gnn projections ------------------------
    # Stack prompt-mean and LN(eos) into a single sublane-padded [8, H] LHS so the two
    # tiny matmuls share one MXU pipeline fill / result drain.
    txt_prompt = jnp.mean(tok[0], axis=0, keepdims=True)                    # [1, H]
    lhs = jnp.concatenate([txt_prompt, eos_ln, jnp.zeros((6, H), f32)], axis=0)   # [8, H]
    proj = jnp.dot(lhs, w_ref[...], preferred_element_type=f32) + b_ref[...]      # [8, G]
    gnn_prompt = proj[0:1]                                                  # [1, G]
    eos_gnn = proj[1:2]                                                     # [1, G]

    # ---- combined gnn rows [prompt; sentences], l2-normalized once -------------------
    # (PyTorch normalizes gnn_combined rows then re-normalizes corr_gnn_emb; normalizing a
    #  unit vector again is the identity, so one pass is exact for ||x|| >= eps.)
    g_all = jnp.concatenate([gnn_prompt, gnn_ref[...]], axis=0)             # [S, G]
    inv_g = lax.rsqrt(jnp.maximum(jnp.sum(g_all * g_all, axis=-1, keepdims=True),
                                  EPS_NORM * EPS_NORM))
    g_n = g_all * inv_g                                                     # [S, G]

    # ---- assemble the whole lane-dense slab in-register -------------------------------
    # Token rows: cat(tok_n, gnn_row, zero-pad) along lanes, then flatten (S,T)->rows.
    g_bcast = jnp.broadcast_to(g_n[:, None, :], (S, T, G))
    tok_rows = jnp.concatenate(
        [tok_n, g_bcast, jnp.zeros((S, T, PAD - H - G), f32)], axis=-1
    ).reshape(S * T, PAD)                                                   # [S*T, 128]

    # Single shared EOS row (identical for every sentence): cat([gnn, tok]) per the reference.
    eos_row = jnp.concatenate(
        [eos_gnn, eos_ln, jnp.zeros((1, PAD - G - H), f32)], axis=-1)       # [1, 128]

    n_tail = out_ref.shape[0] - (S * T + 1)                                 # sublane pad rows
    tail = jnp.zeros((n_tail, PAD), f32)

    # ONE full-width, lane-dense store of the whole output (unmasked vst, output written once).
    out_ref[...] = jnp.concatenate([tok_rows, eos_row, tail], axis=0)


def combine_token_embs(token_embs, sentence_graph_embs, eos_tok,
                       w_llm2gnn, b_llm2gnn, ln_gamma, ln_beta):
    """One gridless pallas_call: LayerNorm + fused llm2gnn matmul + prompt mean +
    all l2 norms + slab assembly, written with a single full-width store to a
    contiguous (8,128)-tiled [R_PAD, 128] output."""
    S, T, _ = token_embs.shape
    rows = S * T + 1                      # all token rows + one shared EOS row
    r_pad = ((rows + 7) // 8) * 8         # round up to a sublane multiple
    # TODO(synk): for production sizes / many graphs, add a leading batch axis and a
    # ("parallel",) grid with BlockSpecs so v7x's second TensorCore is used and VMEM
    # (64 MiB on v7x) is tiled; at this toy size a gridless call is launch-bound anyway.
    return pl.pallas_call(
        _fused_kernel,
        out_shape=jax.ShapeDtypeStruct((r_pad, PAD), jnp.float32),
    )(token_embs, sentence_graph_embs, eos_tok,
      w_llm2gnn, b_llm2gnn.reshape(1, G), ln_gamma.reshape(1, H), ln_beta.reshape(1, H))


# ------------------------------------ driver ------------------------------------
if __name__ == "__main__":
    key = jax.random.PRNGKey(0)
    N_SENT = 6        # sentences in the (single) graph
    T = 8             # tokens per sentence (fixed; PyTorch path is ragged)
    S = N_SENT + 1    # + 'Summarize: ' prompt at index 0
    VOCAB = 64
    EOS_ID = 1        # '</s>' in the T5 tokenizer

    k = jax.random.split(key, 4)

    # --- parameters defined by JointOrchestrator.__init__ (deterministic, synthetic) ---
    xavier_bound = (6.0 / (H + G)) ** 0.5                      # xavier_uniform_ on llm2gnn
    w_llm2gnn = jax.random.uniform(k[0], (H, G), jnp.float32, -xavier_bound, xavier_bound)
    b_llm2gnn = jnp.zeros((G,), jnp.float32)                   # constant_(bias, 0.0)
    ln_gamma = jnp.ones((H,), jnp.float32)                     # special_ln defaults
    ln_beta = jnp.zeros((H,), jnp.float32)
    shared_emb = jax.random.normal(k[1], (VOCAB, H), jnp.float32)  # text_encoder_model.shared

    # --- stand-ins for external submodule outputs ---
    # TODO(synk): RelHetGraph (GNN), LongTextTokenEncoder (T5 encoder) and CustomT5 are
    # external submodules not defined in this file; their outputs are synthesized here.
    sentence_graph_embs = jax.random.normal(k[2], (N_SENT, G), jnp.float32)
    token_embs = jax.random.normal(k[3], (S, T, H), jnp.float32)   # index 0 = prompt tokens
    # TODO(synk): real prompts/sentences are ragged; the prompt mean here assumes all T
    # token slots are valid (a length mask would be needed for padded inputs).

    eos_tok = shared_emb[EOS_ID][None, :]                          # [1, H]

    combined_padded = combine_token_embs(token_embs, sentence_graph_embs, eos_tok,
                                         w_llm2gnn, b_llm2gnn, ln_gamma, ln_beta)
    combined_padded = jax.block_until_ready(combined_padded)       # [R_PAD, 128]

    # glue: ONE device-side slice + ONE device->host transfer, then NumPy-only rebuilding
    # of the nested list-of-lists structure of _combine_token_embs.
    combined = combined_padded[:S * T + 1, :D]                     # drop lane/row padding
    combined_np = np.asarray(jax.device_get(combined))             # [S*T + 1, D]
    eos_row_np = combined_np[S * T]                                # shared EOS special emb

    graph_tokens = []
    for s in range(S):
        rows = combined_np[s * T:(s + 1) * T]                      # [T, D] token rows
        if s > 0:                                                  # EOS appended only for sentences
            rows = np.concatenate([rows, eos_row_np[None, :]], axis=0)
        graph_tokens.append(rows[:, None, :])                      # torch.stack of [1, D] rows
    concat_embedding_list = [graph_tokens]                         # one graph in the batch

    print("KERNEL_OK")
</pallas_src>

<mosaic_0001>
module attributes {stable_mosaic.version = 11 : i64} {
  func.func @_fused_kernel(%arg0: memref<7x8x32xf32, #tpu.memory_space<vmem>>, %arg1: memref<6x16xf32, #tpu.memory_space<vmem>>, %arg2: memref<1x32xf32, #tpu.memory_space<vmem>>, %arg3: memref<32x16xf32, #tpu.memory_space<vmem>>, %arg4: memref<1x16xf32, #tpu.memory_space<vmem>>, %arg5: memref<1x32xf32, #tpu.memory_space<vmem>>, %arg6: memref<1x32xf32, #tpu.memory_space<vmem>>, %arg7: memref<64x128xf32, #tpu.memory_space<vmem>>) attributes {dimension_semantics = [], scalar_prefetch = 0 : i64, scratch_operands = 0 : i64, tpu.core_type = #tpu.core_type<tc>} {
    %c0 = arith.constant 0 : index
    %c0_0 = arith.constant 0 : index
    %c0_1 = arith.constant 0 : index
    %0 = vector.load %arg0[%c0, %c0_0, %c0_1] : memref<7x8x32xf32, #tpu.memory_space<vmem>>, vector<7x8x32xf32>
    %1 = arith.mulf %0, %0 : vector<7x8x32xf32>
    %cst = arith.constant dense<0.000000e+00> : vector<7x8xf32>
    %2 = vector.multi_reduction <add>, %1, %cst [2] : vector<7x8x32xf32> to vector<7x8xf32>
    %3 = vector.shape_cast %2 : vector<7x8xf32> to vector<7x8x1xf32>
    %cst_2 = arith.constant 1.000000e-24 : f32
    %4 = vector.broadcast %cst_2 : f32 to vector<7x8x1xf32>
    %5 = arith.maximumf %3, %4 : vector<7x8x1xf32>
    %6 = math.rsqrt %5 : vector<7x8x1xf32>
    %7 = vector.broadcast %6 : vector<7x8x1xf32> to vector<7x8x32xf32>
    %8 = arith.mulf %0, %7 : vector<7x8x32xf32>
    %c0_3 = arith.constant 0 : index
    %c0_4 = arith.constant 0 : index
    %9 = vector.load %arg2[%c0_3, %c0_4] : memref<1x32xf32, #tpu.memory_space<vmem>>, vector<1x32xf32>
    %cst_5 = arith.constant dense<0.000000e+00> : vector<1xf32>
    %10 = vector.multi_reduction <add>, %9, %cst_5 [1] : vector<1x32xf32> to vector<1xf32>
    %11 = vector.shape_cast %10 : vector<1xf32> to vector<1x1xf32>
    %cst_6 = arith.constant 3.200000e+01 : f32
    %12 = vector.broadcast %cst_6 : f32 to vector<1x1xf32>
    %13 = arith.divf %11, %12 : vector<1x1xf32>
    %14 = vector.broadcast %13 : vector<1x1xf32> to vector<1x32xf32>
    %15 = arith.subf %9, %14 : vector<1x32xf32>
    %16 = arith.mulf %15, %15 : vector<1x32xf32>
    %cst_7 = arith.constant dense<0.000000e+00> : vector<1xf32>
    %17 = vector.multi_reduction <add>, %16, %cst_7 [1] : vector<1x32xf32> to vector<1xf32>
    %18 = vector.shape_cast %17 : vector<1xf32> to vector<1x1xf32>
    %cst_8 = arith.constant 3.200000e+01 : f32
    %19 = vector.broadcast %cst_8 : f32 to vector<1x1xf32>
    %20 = arith.divf %18, %19 : vector<1x1xf32>
    %21 = vector.broadcast %13 : vector<1x1xf32> to vector<1x32xf32>
    %22 = arith.subf %9, %21 : vector<1x32xf32>
    %cst_9 = arith.constant 9.99999974E-6 : f32
    %23 = vector.broadcast %cst_9 : f32 to vector<1x1xf32>
    %24 = arith.addf %20, %23 : vector<1x1xf32>
    %25 = math.rsqrt %24 : vector<1x1xf32>
    %26 = vector.broadcast %25 : vector<1x1xf32> to vector<1x32xf32>
    %27 = arith.mulf %22, %26 : vector<1x32xf32>
    %c0_10 = arith.constant 0 : index
    %c0_11 = arith.constant 0 : index
    %28 = vector.load %arg5[%c0_10, %c0_11] : memref<1x32xf32, #tpu.memory_space<vmem>>, vector<1x32xf32>
    %29 = arith.mulf %27, %28 : vector<1x32xf32>
    %c0_12 = arith.constant 0 : index
    %c0_13 = arith.constant 0 : index
    %30 = vector.load %arg6[%c0_12, %c0_13] : memref<1x32xf32, #tpu.memory_space<vmem>>, vector<1x32xf32>
    %31 = arith.addf %29, %30 : vector<1x32xf32>
    %32 = vector.extract_strided_slice %0 {offsets = [0, 0, 0], sizes = [1, 8, 32], strides = [1, 1, 1]} : vector<7x8x32xf32> to vector<1x8x32xf32>
    %33 = vector.shape_cast %32 : vector<1x8x32xf32> to vector<8x32xf32>
    %cst_14 = arith.constant dense<0.000000e+00> : vector<32xf32>
    %34 = vector.multi_reduction <add>, %33, %cst_14 [0] : vector<8x32xf32> to vector<32xf32>
    %35 = vector.shape_cast %34 : vector<32xf32> to vector<1x32xf32>
    %cst_15 = arith.constant 8.000000e+00 : f32
    %36 = vector.broadcast %cst_15 : f32 to vector<1x32xf32>
    %37 = arith.divf %35, %36 : vector<1x32xf32>
    %cst_16 = arith.constant 0.000000e+00 : f32
    %38 = vector.broadcast %cst_16 : f32 to vector<6x32xf32>
    %39 = tpu.concatenate %37, %31, %38 in 0 : vector<1x32xf32>, vector<1x32xf32>, vector<6x32xf32> -> vector<8x32xf32>
    %c0_17 = arith.constant 0 : index
    %c0_18 = arith.constant 0 : index
    %40 = vector.load %arg3[%c0_17, %c0_18] : memref<32x16xf32, #tpu.memory_space<vmem>>, vector<32x16xf32>
    %cst_19 = arith.constant dense<0.000000e+00> : vector<8x16xf32>
    %41 = tpu.matmul %39, %40, %cst_19 {dimension_numbers = #tpu.dot_dimension_numbers<[1], [0], [0], [1], [0, 0, 1, 1], [], []>} : vector<8x32xf32>, vector<32x16xf32>, vector<8x16xf32> -> vector<8x16xf32>
    %c0_20 = arith.constant 0 : index
    %c0_21 = arith.constant 0 : index
    %42 = vector.load %arg4[%c0_20, %c0_21] : memref<1x16xf32, #tpu.memory_space<vmem>>, vector<1x16xf32>
    %43 = vector.broadcast %42 : vector<1x16xf32> to vector<8x16xf32>
    %44 = arith.addf %41, %43 : vector<8x16xf32>
    %45 = vector.extract_strided_slice %44 {offsets = [0, 0], sizes = [1, 16], strides = [1, 1]} : vector<8x16xf32> to vector<1x16xf32>
    %46 = vector.extract_strided_slice %44 {offsets = [1, 0], sizes = [1, 16], strides = [1, 1]} : vector<8x16xf32> to vector<1x16xf32>
    %c0_22 = arith.constant 0 : index
    %c0_23 = arith.constant 0 : index
    %47 = vector.load %arg1[%c0_22, %c0_23] : memref<6x16xf32, #tpu.memory_space<vmem>>, vector<6x16xf32>
    %48 = tpu.concatenate %45, %47 in 0 : vector<1x16xf32>, vector<6x16xf32> -> vector<7x16xf32>
    %49 = arith.mulf %48, %48 : vector<7x16xf32>
    %cst_24 = arith.constant dense<0.000000e+00> : vector<7xf32>
    %50 = vector.multi_reduction <add>, %49, %cst_24 [1] : vector<7x16xf32> to vector<7xf32>
    %51 = vector.shape_cast %50 : vector<7xf32> to vector<7x1xf32>
    %cst_25 = arith.constant 1.000000e-24 : f32
    %52 = vector.broadcast %cst_25 : f32 to vector<7x1xf32>
    %53 = arith.maximumf %51, %52 : vector<7x1xf32>
    %54 = math.rsqrt %53 : vector<7x1xf32>
    %55 = vector.broadcast %54 : vector<7x1xf32> to vector<7x16xf32>
    %56 = arith.mulf %48, %55 : vector<7x16xf32>
    %57 = vector.shape_cast %56 : vector<7x16xf32> to vector<7x1x16xf32>
    %58 = vector.shape_cast %57 : vector<7x1x16xf32> to vector<7x1x16xf32>
    %59 = vector.broadcast %58 : vector<7x1x16xf32> to vector<7x8x16xf32>
    %cst_26 = arith.constant 0.000000e+00 : f32
    %60 = vector.broadcast %cst_26 : f32 to vector<7x8x80xf32>
    %61 = tpu.concatenate %8, %59, %60 in 2 : vector<7x8x32xf32>, vector<7x8x16xf32>, vector<7x8x80xf32> -> vector<7x8x128xf32>
    %62 = vector.shape_cast %61 : vector<7x8x128xf32> to vector<56x128xf32>
    %cst_27 = arith.constant 0.000000e+00 : f32
    %63 = vector.broadcast %cst_27 : f32 to vector<1x80xf32>
    %64 = tpu.concatenate %46, %31, %63 in 1 : vector<1x16xf32>, vector<1x32xf32>, vector<1x80xf32> -> vector<1x128xf32>
    %cst_28 = arith.constant 0.000000e+00 : f32
    %65 = vector.broadcast %cst_28 : f32 to vector<7x128xf32>
    %66 = tpu.concatenate %62, %64, %65 in 0 : vector<56x128xf32>, vector<1x128xf32>, vector<7x128xf32> -> vector<64x128xf32>
    %c0_29 = arith.constant 0 : index
    %c0_30 = arith.constant 0 : index
    %67 = vector.load %arg7[%c0_29, %c0_30] : memref<64x128xf32, #tpu.memory_space<vmem>>, vector<64x128xf32>
    tpu.vector_store %arg7[%c0_29, %c0_30], %66 {strides = array<i32>} : memref<64x128xf32, #tpu.memory_space<vmem>>, vector<64x128xf32>,
    return
  }
}

</mosaic_0001>

<bundles_post_ra>
// kernel: tpu_custom_call.1
= control target key start
LH: loop header
LB: loop body
LE: loop exit
PB: predicated region body
PF: predicated region fallthrough
CT: control target
= control target key end

     0   :  { %12 = vsyncpa [#allocation3], 0  ;;  %s671_s0 = inlined_call_operand.hbm [shape: f32[7,8,32], index: 0, kind: input, shape index: {}]   ;;  %s672_s1 = inlined_call_operand.vmem [shape: f32[6,16], index: 1, kind: input, shape index: {}]   ;;  %s673_s2 = inlined_call_operand.vmem [shape: f32[1,32], index: 2, kind: input, shape index: {}]   ;;  %s674_s3 = inlined_call_operand.vmem [shape: f32[32,16], index: 3, kind: input, shape index: {}]   ;;  %s675_s4 = inlined_call_operand.vmem [shape: f32[1,16], index: 4, kind: input, shape index: {}]   ;;  %s676_s5 = inlined_call_operand.vmem [shape: f32[1,32], index: 5, kind: input, shape index: {}]   ;;  %s677_s6 = inlined_call_operand.vmem [shape: f32[1,32], index: 6, kind: input, shape index: {}]   ;;  %s678_s7 = inlined_call_operand.hbm [shape: f32[64,128], index: 7, kind: output, shape index: {}]  }
   0x1   :  { %13 = vsyncpa [#allocation4], 0  ;;  %s482_s24 = smov [#allocation2]   ;;  %s434_s28 = scalar_lea.hbm %s671_s0, 896 }
   0x2   :  { %s19_s25 = sshll.u32 %s482_s24, 4  ;;  %p435_p0 = scmp.ne.s32.totalorder %s671_s0, %s434_s28  ;;  %s20_s25 = int_to_ptr.vmem [resolvable:$true] %s19_s25 }
   0x3   :  { %p438_p1 = scmp.lt.u32.totalorder %s434_s28, %s671_s0 }
   0x5   :  { %p440_p2 = pnand %p438_p1, %p435_p0 }
   0x7   :  { %443 = shalt.err (!%p440_p2)
}
   0x8   :  { %s444_s10 = scalar_lea.vmem %s20_s25, 896  ;;  %p449_p4 = scmp.lt.s32.totalorder %s20_s25, %s20_s25 }
   0x9   :  { %p445_p3 = scmp.ne.s32.totalorder %s20_s25, %s444_s10  ;;  %p450_p5 = scmp.lt.s32.totalorder %s444_s10, %s444_s10 }
   0xb   :  { %p451_p6 = por %p450_p5, %p449_p4 }
   0xd   :  { %p452_p7 = pnand %p451_p6, %p445_p3 }
   0xf   :  { %455 = shalt.err (!%p452_p7)
}
  0x10   :  { %s483_s11 = smov 128   ;;  %s484_s12 = smov 8  }
  0x11   :  { %25 = dma.hbm_to_vmem [thread:$0]  %s671_s0, 896, %s20_s25, [#allocation3], %s483_s11, %s483_s11, %s484_s12  }
  0x12   :  { %478 = dma.done.wait [#allocation3], 896  }
  0x13   :  { %479 = vsyncadd [#allocation3], 4294966400  ;;  %vm99_vm0 = vcmask 253952   ;;  %v98_v0 = vld [vmem:[%s673_s2] sm:$0x1]  ;;  %v550_v4 = vld [vmem:[#allocation2 + $0x8] sm:$0xff]  ;;  %v128_v33 = vlaneseq }
  0x14   :  { %v100_v1 = vsel %vm99_vm0, %v98_v0, 0.0  ;;  %v49_v7 = vmul.f32 %v550_v4, %v550_v4  ;;  %vm55_vm1 = vcmask 261120   ;;  %v554_v8 = vld [vmem:[#allocation2 + $0x18] sm:$0xff]  ;;  %v559_v12 = vld [vmem:[#allocation2 + $0x28] sm:$0xff]  ;;  %v137_v16 = vld [vmem:[%s674_s3] sm:$0xff]  ;;  %v485_v19 = vmov 0.0|0.0  }
  0x15   :  { %101 = vadd.xlane.f32.xlu0 %v100_v1  ;;  %v51_v11 = vmul.f32 %v554_v8, %v554_v8  ;;  %v53_v14 = vmul.f32 %v559_v12, %v559_v12  ;;  %v138_v17 = vld [vmem:[%s674_s3 + $0x8] sm:$0xff]  ;;  %v139_v18 = vld [vmem:[%s674_s3 + $0x10] sm:$0xff]  ;;  %400 = vmatprep.subr.bf16.mxu0 %v485_v19  ;;  %v140_v21 = vld [vmem:[%s674_s3 + $0x18] sm:$0xff]  ;;  %vm486_vm2 = vmmov 0   ;;  %v487_v23 = vmov 0.0   ;;  %s488_s26 = smov 16  }
  0x16   :  { %v59_v10 = vsel %vm55_vm1, %v49_v7, 0.0  ;;  %v401_v20 = vpack.c.bf16 %v138_v17, %v137_v16  ;;  %v404_v22 = vpack.c.bf16 %v140_v21, %v139_v18  ;;  %397 = vmatprep.mubr.msk.f32.mxu0 %vm486_vm2, %v487_v23  ;;  %v577_v24 = vld [vmem:[#allocation2] sm:$0xff]  ;;  %v129_v35 = vshrl.u32 %v128_v33, 7 }
  0x17   :  { %v65_v13 = vsel %vm55_vm1, %v51_v11, 0.0  ;;  %v71_v15 = vsel %vm55_vm1, %v53_v14, 0.0  ;;  %v118_v25 = vsel %vm55_vm1, %v577_v24, 0.0  ;;  %v114_v37 = vld [vmem:[%s676_s5] sm:$0x1]  ;;  %vm133_vm3 = vcmask 1040384  }
  0x18   :  { %402 = vmatpush3.bf16.msra.mxu0 %v401_v20  ;;  %v119_v26 = vrot.slane %v118_v25, 4  ;;  %v116_v40 = vld [vmem:[%s677_s6] sm:$0x1]  ;;  %v587_v42 = vsub.s32 0, %v129_v35  ;;  %vm135_vm4 = vcmask 1041408   ;;  %vm350_vm5 = vcmask 130048  }
  0x19   :  { %403 = vmatprep.subr.bf16.mxu0 %v485_v19  ;;  %v221_v51 = vld [vmem:[%s672_s1] sm:$0x3f]  ;;  %vm339_vm6 = vcmask 392192   ;;  %vm227_vm7 = vcmask 129024   ;;  %v48_v62 = vmul.f32 %v577_v24, %v577_v24  ;;  %v489_v17 = vmov 1966171168  }
  0x1a   :  { %v120_v28 = vadd.f32 %v119_v26, %v118_v25  ;;  %v382_v52 = vld [vmem:[%s675_s4] ss:$0 sm:$0xff]  ;;  %v223_v53 = vrot.slane %v221_v51, 7  ;;  %v237_v18 = vunpack.c.l.s4 %v489_v17  ;;  %s490_s1 = smov 32   ;;  %s491_s4 = smov [#allocation5]  }
  0x1b   :  { %s370_s29 = sshll.u32 %s491_s4, 4  ;;  %s371_s29 = int_to_ptr.vmem [resolvable:$true] %s370_s29 }
  0x1c   :  { %405 = vmatpush3.bf16.msra.mxu0 %v404_v22  ;;  %v121_v31 = vrot.slane %v120_v28, 2  ;;  %v238_v19 = vunpack.c.0.s8 %v237_v18  ;;  %s456_s30 = scalar_lea.vmem %s371_s29, 1024  ;;  %p461_p9 = scmp.lt.s32.totalorder %s371_s29, %s371_s29 }
  0x1d   :  { %p457_p8 = scmp.ne.s32.totalorder %s371_s29, %s456_s30  ;;  %p462_p10 = scmp.lt.s32.totalorder %s456_s30, %s456_s30 }
  0x1e   :  { %v122_v32 = vadd.f32 %v121_v31, %v120_v28  ;;  %v241_v20 = vsub.s32 %v238_v19, %v129_v35 }
  0x1f   :  { %p463_p11 = por %p462_p10, %p461_p9 }
  0x20   :  { %v123_v34 = vrot.slane %v122_v32, 1 }
  0x21   :  { %p464_p12 = pnand %p463_p11, %p457_p8 }
  0x22   :  { %v124_v39 = vadd.f32 %v123_v34, %v122_v32 }
  0x24   :  { %v126_v44 = vmul.f32 0.125, %v124_v39 }
  0xa2   :  { %v102_v2 = vpop.xlane.xlu0 %101 }
  0xa3   :  { %v104_v3 = vmul.f32 0.03125, %v102_v2 }
  0xa5   :  { %v105_v5 = vsub.f32 %v98_v0, %v104_v3  ;;  %v608_v0 = vld [vmem:[#allocation2 + $0x10] sm:$0xff]  ;;  %v56_v3 = vsel %vm55_vm1, %v48_v62, 0.0 }
  0xa7   :  { %v106_v6 = vmul.f32 %v105_v5, %v105_v5 }
  0xa9   :  { %v107_v9 = vsel %vm99_vm0, %v106_v6, 0.0  ;;  %v614_v6 = vld [vmem:[#allocation2 + $0x20] sm:$0xff] }
  0xaa   :  { %108 = vadd.xlane.f32.xlu0 %v107_v9  ;;  %v52_v9 = vmul.f32 %v614_v6, %v614_v6 }
  0xac   :  { %v68_v11 = vsel %vm55_vm1, %v52_v9, 0.0 }
  0xae   :  { %60 = vadd.xlane.f32.xlu0 %v59_v10  ;;  %v619_v10 = vld [vmem:[#allocation2 + $0x30] sm:$0xff] }
  0xb2   :  { %66 = vadd.xlane.f32.xlu0 %v65_v13  ;;  %v54_v13 = vmul.f32 %v619_v10, %v619_v10 }
  0xb4   :  { %v74_v14 = vsel %vm55_vm1, %v54_v13, 0.0 }
  0xb6   :  { %72 = vadd.xlane.f32.xlu0 %v71_v15 }
 0x137   :  { %v109_v27 = vpop.xlane.xlu0 %108 }
 0x138   :  { %v110_v29 = vmul.f32 0.03125, %v109_v27 }
 0x13a   :  { %v111_v30 = vadd.f32 1e-05, %v110_v29 }
 0x13b   :  { %v592_v48 = vpop.xlane.xlu0 %60 }
 0x13c   :  { %416 = vrsqrt.f32 %v111_v30 }
 0x13f   :  { %v594_v49 = vpop.xlane.xlu0 %66 }
 0x140   :  { %v80_v51 = vmax.f32 %v594_v49, 1e-24 }
 0x143   :  { %v596_v50 = vpop.xlane.xlu0 %72 }
 0x146   :  { %v417_v36 = vpop.eup %416 }
 0x147   :  { %v113_v38 = vmul.f32 %v417_v36, %v105_v5  ;;  %v50_v5 = vmul.f32 %v608_v0, %v608_v0 }
 0x149   :  { %v115_v41 = vmul.f32 %v114_v37, %v113_v38  ;;  %v62_v7 = vsel %vm55_vm1, %v50_v5, 0.0 }
 0x14b   :  { %v117_v43 = vadd.f32 %v116_v40, %v115_v41 }
 0x14d   :  { %v131_v45 = vrot.slane %v117_v43, %v587_v42 }
 0x14f   :  { %347 = vrot.lane.b32.xlu0 %v131_v45, %s488_s26  ;;  %v134_v46 = vsel %vm133_vm3, %v126_v44, %v131_v45 }
 0x150   :  { %v136_v47 = vsel %vm135_vm4, %v134_v46, 0.0 }
 0x151   :  { %398 = vmatmul.mubr.msk.f32.vlgmr.msra.gmra.mrb[0].mxu0 %vm55_vm1, %v136_v47  ;;  %v78_v47 = vmax.f32 %v592_v48, 1e-24 }
 0x1c1   :  { %v348_v57 = vpop.permute.xlu0 %347 }
 0x224   :  { %v217_v54 = vpop.f32.mrb[0].mxu0 }
 0x225   :  { %v218_v55 = vadd.f32 %v382_v52, %v217_v54  ;;  %v399_v56 = vpop.f32.mrb[1].mxu0  ;;  %v82_v52 = vmax.f32 %v596_v50, 1e-24 }
 0x227   :  { %v351_v58 = vsel %vm350_vm5, %v218_v55, %v348_v57  ;;  %v225_v59 = vsel %vm133_vm3, %v218_v55, %v223_v53 }
 0x228   :  { %v352_v60 = vsel %vm339_vm6, %v351_v58, 0.0  ;;  %v226_v61 = vmul.f32 %v225_v59, %v225_v59 }
 0x229   :  { %v354_v63 = vrot.slane %v352_v60, 1 }
 0x22a   :  { %v228_v1 = vsel %vm227_vm7, %v226_v61, 0.0 }
 0x22b   :  { %v356_v2 = vsel %vm133_vm3, %v354_v63, 0.0  ;;  %229 = vadd.xlane.f32.xlu1 %v228_v1 }
 0x22c   :  { %364 = vst [vmem:[#allocation5 + $0x38] sm:$0xff] %v356_v2 }
 0x22f   :  { %57 = vadd.xlane.f32.xlu1 %v56_v3 }
 0x233   :  { %63 = vadd.xlane.f32.xlu1 %v62_v7 }
 0x237   :  { %69 = vadd.xlane.f32.xlu1 %v68_v11 }
 0x23b   :  { %75 = vadd.xlane.f32.xlu1 %v74_v14 }
 0x2b8   :  { %v230_v15 = vpop.xlane.xlu1 %229 }
 0x2b9   :  { %v231_v16 = vmax.f32 %v230_v15, 1e-24 }
 0x2bb   :  { %418 = vrsqrt.f32 %v231_v16 }
 0x2bc   :  { %v58_v44 = vpop.xlane.xlu1 %57 }
 0x2bd   :  { %v77_v45 = vmax.f32 %v58_v44, 1e-24 }
 0x2bf   :  { %420 = vrsqrt.f32 %v77_v45 }
 0x2c0   :  { %v64_v46 = vpop.xlane.xlu1 %63  ;;  %422 = vrsqrt.f32 %v78_v47 }
 0x2c1   :  { %424 = vrsqrt.f32 %v80_v51  ;;  %v79_v54 = vmax.f32 %v64_v46, 1e-24 }
 0x2c2   :  { %426 = vrsqrt.f32 %v82_v52 }
 0x2c3   :  { %428 = vrsqrt.f32 %v79_v54 }
 0x2c4   :  { %v70_v53 = vpop.xlane.xlu1 %69 }
 0x2c5   :  { %v419_v21 = vpop.eup %418  ;;  %v81_v56 = vmax.f32 %v70_v53, 1e-24 }
 0x2c6   :  { %v233_v22 = vmul.f32 %v419_v21, %v225_v59 }
 0x2c7   :  { %430 = vrsqrt.f32 %v81_v56 }
 0x2c8   :  { %v242_v23 = vrot.slane %v233_v22, %v241_v20  ;;  %v235_v25 = vcombine.high %v233_v22, %v233_v22 }
 0x2c9   :  { %v421_v55 = vpop.eup %420 }
 0x2ca   :  { %v258_v26 = vrot.slane %v242_v23, %v241_v20  ;;  %v250_v27 = vcombine.high %v242_v23, %v242_v23  ;;  %v249_v28 = vrot.slane %v235_v25, %v241_v20  ;;  %v423_v57 = vpop.eup %422  ;;  %v91_v58 = vmul.f32 %v421_v55, %v577_v24 }
 0x2cb   :  { %v425_v59 = vpop.eup %424  ;;  %v92_v50 = vmul.f32 %v423_v57, %v550_v4 }
 0x2cc   :  { %v286_v29 = vrot.slane %v258_v26, %v587_v42  ;;  %v272_v30 = vrot.slane %v250_v27, %v241_v20  ;;  %v251_v31 = vcombine.high %v249_v28, %v249_v28  ;;  %v280_v35 = vcombine.high %v258_v26, %v258_v26  ;;  %v427_v62 = vpop.eup %426 }
 0x2cd   :  { %v265_v39 = vrot.slane %v249_v28, %v241_v20  ;;  %v94_v61 = vmul.f32 %v425_v59, %v554_v8  ;;  %v429_v1 = vpop.eup %428  ;;  %v96_v7 = vmul.f32 %v427_v62, %v559_v12 }
 0x2ce   :  { %311 = vrot.lane.b32.xlu1 %v286_v29, %s490_s1  ;;  %v282_v32 = vcombine.high %v272_v30, %v272_v30  ;;  %v290_v34 = vrot.slane %v272_v30, %v587_v42  ;;  %v279_v36 = vrot.slane %v251_v31, %v241_v20  ;;  %v294_v38 = vrot.slane %v280_v35, %v587_v42 }
 0x2cf   :  { %v302_v40 = vrot.slane %v265_v39, %v587_v42  ;;  %v281_v41 = vcombine.high %v265_v39, %v265_v39  ;;  %v93_v4 = vmul.f32 %v429_v1, %v608_v0 }
 0x2d0   :  { %v298_v33 = vrot.slane %v282_v32, %v587_v42  ;;  %v306_v37 = vrot.slane %v279_v36, %v587_v42 }
 0x2d1   :  { %v310_v43 = vrot.slane %v281_v41, %v587_v42  ;;  %v76_v42 = vpop.xlane.xlu1 %75  ;;  %v431_v11 = vpop.eup %430 }
 0x2d2   :  { %317 = vrot.lane.b32.xlu0 %v298_v33, %s490_s1  ;;  %313 = vrot.lane.b32.xlu1 %v290_v34, %s490_s1  ;;  %v83_v48 = vmax.f32 %v76_v42, 1e-24  ;;  %v95_v12 = vmul.f32 %v431_v11, %v614_v6 }
 0x2d4   :  { %432 = vrsqrt.f32 %v83_v48 }
 0x2d6   :  { %321 = vrot.lane.b32.xlu0 %v306_v37, %s490_s1  ;;  %315 = vrot.lane.b32.xlu1 %v294_v38, %s490_s1 }
 0x2da   :  { %319 = vrot.lane.b32.xlu1 %v302_v40, %s490_s1 }
 0x2de   :  { %323 = vrot.lane.b32.xlu1 %v310_v43, %s490_s1  ;;  %v433_v19 = vpop.eup %432 }
 0x2df   :  { %v97_v22 = vmul.f32 %v433_v19, %v619_v10 }
 0x340   :  { %v312_v60 = vpop.permute.xlu1 %311 }
 0x341   :  { %v332_v49 = vsel %vm55_vm1, %v91_v58, %v312_v60 }
 0x342   :  { %v340_v63 = vsel %vm339_vm6, %v332_v49, 0.0 }
 0x343   :  { %357 = vst [vmem:[#allocation5] sm:$0xff] %v340_v63 }
 0x344   :  { %v318_v2 = vpop.permute.xlu0 %317  ;;  %v314_v3 = vpop.permute.xlu1 %313 }
 0x345   :  { %v335_v24 = vsel %vm55_vm1, %v94_v61, %v318_v2  ;;  %v333_v5 = vsel %vm55_vm1, %v92_v50, %v314_v3 }
 0x346   :  { %v343_v9 = vsel %vm339_vm6, %v335_v24, 0.0  ;;  %v341_v8 = vsel %vm339_vm6, %v333_v5, 0.0 }
 0x347   :  { %360 = vst [vmem:[#allocation5 + $0x18] sm:$0xff] %v343_v9  ;;  %358 = vst [vmem:[#allocation5 + $0x8] sm:$0xff] %v341_v8 }
 0x348   :  { %v322_v13 = vpop.permute.xlu0 %321  ;;  %v316_v14 = vpop.permute.xlu1 %315 }
 0x349   :  { %v337_v15 = vsel %vm55_vm1, %v96_v7, %v322_v13  ;;  %v334_v16 = vsel %vm55_vm1, %v93_v4, %v316_v14 }
 0x34a   :  { %v345_v17 = vsel %vm339_vm6, %v337_v15, 0.0  ;;  %v342_v18 = vsel %vm339_vm6, %v334_v16, 0.0 }
 0x34b   :  { %362 = vst [vmem:[#allocation5 + $0x28] sm:$0xff] %v345_v17  ;;  %359 = vst [vmem:[#allocation5 + $0x10] sm:$0xff] %v342_v18 }
 0x34c   :  { %v320_v20 = vpop.permute.xlu1 %319 }
 0x34d   :  { %v336_v21 = vsel %vm55_vm1, %v95_v12, %v320_v20 }
 0x34e   :  { %v344_v0 = vsel %vm339_vm6, %v336_v21, 0.0 }
 0x34f   :  { %361 = vst [vmem:[#allocation5 + $0x20] sm:$0xff] %v344_v0 }
 0x350   :  { %v324_v23 = vpop.permute.xlu1 %323 }
 0x351   :  { %v338_v25 = vsel %vm55_vm1, %v97_v22, %v324_v23 }
 0x352   :  { %v346_v26 = vsel %vm339_vm6, %v338_v25, 0.0 }
 0x353   :  { %363 = vst [vmem:[#allocation5 + $0x30] sm:$0xff] %v346_v26 }
 0x354   :  { %467 = shalt.err (!%p464_p12)
}
 0x355   :  { %s468_s10 = scalar_lea.hbm %s678_s7, 1024 }
 0x356   :  { %p469_p13 = scmp.ne.s32.totalorder %s678_s7, %s468_s10  ;;  %p472_p0 = scmp.lt.u32.totalorder %s468_s10, %s678_s7 }
 0x358   :  { %p474_p1 = pnand %p472_p0, %p469_p13 }
 0x35a   :  { %477 = shalt.err (!%p474_p1)
}
 0x35b   :  { %376 = dma.vmem_to_hbm [thread:$0]  %s371_s29, 1024, %s678_s7, [#allocation4], %s483_s11, %s483_s11, %s484_s12  }
 0x35c   :  { %480 = dma.done.wait [#allocation4], 1024  }
 0x35d   :  { %481 = vsyncadd [#allocation4], 4294966272 }
 0x35e   :  { %380 = vsyncpa [#allocation3], 1 }
 0x35f   :  { %381 = vsyncpa [#allocation4], 1 }

</bundles_post_ra>
